<compile_context>
chip_gen: v6e
topology: v6e:2x2x1
jax: 0.10.0
libtpu: 0.0.40
codegen_flags: <defaults>
</compile_context>

<pallas_src>
import jax
import jax.numpy as jnp
from jax import lax
from jax.experimental import pallas as pl
from jax.experimental.pallas import tpu as pltpu


def _make_tiled_kernel(B, T, F, tile_b, tile_t, chunk):
    """Streaming sum-of-squares kernel over (tile_b, tile_t, F) blocks."""
    n_chunks = tile_t // chunk
    n_iters = tile_b * n_chunks
    mask_t = (T % tile_t) != 0          # ragged tail along frames
    mask_b = (B % tile_b) != 0          # ragged tail along batch

    def kernel(x_ref, y_ref, diff_ref, ysq_ref):
        bi = pl.program_id(0)
        ti = pl.program_id(1)

        @pl.when(ti == 0)
        def _init():
            diff_ref[...] = jnp.zeros_like(diff_ref)
            ysq_ref[...] = jnp.zeros_like(ysq_ref)

        b_base = bi * tile_b
        t_base = ti * tile_t

        def body(c, carry):
            # Decompose the flat chunk counter into (batch-in-block, frame-chunk).
            if n_chunks == 1:
                bb, off = c, 0
            elif tile_b == 1:
                bb, off = 0, pl.multiple_of(c * chunk, 8)
            else:
                bb = c // n_chunks
                off = pl.multiple_of((c % n_chunks) * chunk, 8)

            x = x_ref[bb, pl.ds(off, chunk), :].astype(jnp.float32)
            y = y_ref[bb, pl.ds(off, chunk), :].astype(jnp.float32)
            d = y - x

            if mask_t or mask_b:
                valid = None
                if mask_t:
                    row = lax.broadcasted_iota(jnp.int32, (chunk, 1), 0)
                    valid = row < (T - (t_base + off))
                if mask_b:
                    ok_b = (b_base + bb) < B
                    valid = ok_b if valid is None else jnp.logical_and(valid, ok_b)
                d = jnp.where(valid, d, 0.0)
                y = jnp.where(valid, y, 0.0)

            # Leading-axis reduction onto vreg-shaped (8, F) accumulators:
            # pure VPU adds each chunk; the single cross-lane reduce happens
            # in the wrapper on the tiny partial outputs.
            diff_ref[...] += (d * d).reshape(chunk // 8, 8, F).sum(axis=0)
            ysq_ref[...] += (y * y).reshape(chunk // 8, 8, F).sum(axis=0)
            return carry

        lax.fori_loop(0, n_iters, body, 0, unroll=n_iters <= 8)

    return kernel


def _whole_array_kernel(x_ref, y_ref, diff_ref, ysq_ref):
    # Fallback for T < 8 (tiny frame counts): single whole-array block.
    x = x_ref[...].astype(jnp.float32)
    y = y_ref[...].astype(jnp.float32)
    d = y - x
    diff_ref[0, 0] = jnp.sum(d * d)
    ysq_ref[0, 0] = jnp.sum(y * y)


def spectral_convergence_loss(
    x_mag: jax.Array,
    y_mag: jax.Array,
    *,
    target_block_bytes: int = 5 * 1024 * 1024,   # per input per grid step (~10 MiB HBM/step)
    chunk_bytes_f32: int = 3 * 512 * 1024,       # <=1.5 MiB f32 per inner compute chunk
) -> jax.Array:
    """Spectral convergence loss: norm(y - x) / norm(y) (Frobenius over all elems)."""
    assert x_mag.shape == y_mag.shape
    B, T, F = x_mag.shape
    itemsize = jnp.dtype(x_mag.dtype).itemsize
    n_elems = B * T * F

    if T < 8:
        # TODO(synk): tiny-frame fallback keeps the whole array in VMEM; tile over
        # batch if B*T*F ever gets large with T < 8.
        diff_p, ysq_p = pl.pallas_call(
            _whole_array_kernel,
            out_shape=(jax.ShapeDtypeStruct((1, 1), jnp.float32),
                       jax.ShapeDtypeStruct((1, 1), jnp.float32)),
        )(x_mag, y_mag)
        return jnp.sqrt(diff_p[0, 0]) / jnp.sqrt(ysq_p[0, 0])

    # ---- tile sizing (Python ints; no wrapper-side pad/reshape of the data) ----
    # Inner compute chunk: bounds f32 temporaries, multiple of 8 sublanes, <= T.
    chunk = max(8, min(1024, (chunk_bytes_f32 // (F * 4)) // 8 * 8))
    chunk = min(chunk, (T // 8) * 8)
    # Frame tile: multiple of `chunk`, sized so one input block ~= target_block_bytes.
    budget_rows = max(chunk, target_block_bytes // (F * itemsize))
    tile_t = min(budget_rows // chunk, T // chunk) * chunk
    # If frames alone don't reach the byte target, take several batch entries per block.
    tile_b = max(1, min(B, budget_rows // tile_t))

    nb = pl.cdiv(B, tile_b)
    nt = pl.cdiv(T, tile_t)

    kernel = _make_tiled_kernel(B, T, F, tile_b, tile_t, chunk)

    diff_p, ysq_p = pl.pallas_call(
        kernel,
        out_shape=(jax.ShapeDtypeStruct((nb * 8, F), jnp.float32),
                   jax.ShapeDtypeStruct((nb * 8, F), jnp.float32)),
        grid_spec=pltpu.PrefetchScalarGridSpec(
            num_scalar_prefetch=0,
            grid=(nb, nt),
            in_specs=[
                pl.BlockSpec((tile_b, tile_t, F), lambda b, t: (b, t, 0)),
                pl.BlockSpec((tile_b, tile_t, F), lambda b, t: (b, t, 0)),
            ],
            out_specs=[
                pl.BlockSpec((8, F), lambda b, t: (b, 0)),
                pl.BlockSpec((8, F), lambda b, t: (b, 0)),
            ],
        ),
        compiler_params=pltpu.CompilerParams(
            # batch-block axis parallel -> megacore/v7x splits the streaming
            # reduction across TensorCores; frame axis is the reduction axis.
            dimension_semantics=("parallel", "arbitrary"),
            vmem_limit_bytes=42 * 1024 * 1024,
        ),
        cost_estimate=pl.CostEstimate(
            flops=5 * n_elems,
            transcendentals=0,
            bytes_accessed=2 * n_elems * itemsize + 4 * nb * 8 * F * 4,
        ),
    )(x_mag, y_mag)

    # TODO(synk): when nb == 1 on multi-TensorCore chips, also split the frame
    #   axis into per-core partials for ~2x HBM bandwidth.
    # TODO(synk): F not a multiple of 128 (65/257/513/1025 STFT bins) leaves lane
    #   padding in the HBM tiled layout that every DMA reads; a lane-dense
    #   producer-side layout would recover up to ~2x for those shapes.

    # Tiny finalize in plain XLA: combine per-batch-block partials, sqrt ratio.
    diff_sum = jnp.sum(diff_p)
    y_sum = jnp.sum(ysq_p)
    return jnp.sqrt(diff_sum) / jnp.sqrt(y_sum)


def _reference(x, y):
    return jnp.linalg.norm(y - x) / jnp.linalg.norm(y)


if __name__ == "__main__":
    key = jax.random.PRNGKey(0)
    k = jax.random.split(key, 10)

    # 1) Primary test: (batch, #frames, #freq_bins), nice shapes.
    x1 = jnp.abs(jax.random.normal(k[0], (2, 16, 128), dtype=jnp.float32))
    y1 = jnp.abs(jax.random.normal(k[1], (2, 16, 128), dtype=jnp.float32))
    out1 = jax.block_until_ready(spectral_convergence_loss(x1, y1))
    assert jnp.allclose(out1, _reference(x1, y1), rtol=2e-5, atol=1e-6), out1

    # 2) Ragged frames (13 % 8 != 0) and odd freq bins (65) -> frame-tail masking.
    x2 = jnp.abs(jax.random.normal(k[2], (3, 13, 65), dtype=jnp.float32))
    y2 = jnp.abs(jax.random.normal(k[3], (3, 13, 65), dtype=jnp.float32))
    out2 = jax.block_until_ready(spectral_convergence_loss(x2, y2))
    assert jnp.allclose(out2, _reference(x2, y2), rtol=2e-5, atol=1e-6), out2

    # 3) Small byte target -> batch tiling with a partial batch block (batch mask).
    x3 = jnp.abs(jax.random.normal(k[4], (5, 40, 128), dtype=jnp.float32))
    y3 = jnp.abs(jax.random.normal(k[5], (5, 40, 128), dtype=jnp.float32))
    out3 = jax.block_until_ready(
        spectral_convergence_loss(x3, y3, target_block_bytes=64 * 1024))
    assert jnp.allclose(out3, _reference(x3, y3), rtol=2e-5, atol=1e-6), out3

    # 4) Multi-chunk inner loop + partial frame block on the last grid step.
    x4 = jnp.abs(jax.random.normal(k[6], (1, 100, 128), dtype=jnp.float32))
    y4 = jnp.abs(jax.random.normal(k[7], (1, 100, 128), dtype=jnp.float32))
    out4 = jax.block_until_ready(
        spectral_convergence_loss(x4, y4, target_block_bytes=16 * 1024,
                                  chunk_bytes_f32=8 * 1024))
    assert jnp.allclose(out4, _reference(x4, y4), rtol=2e-5, atol=1e-6), out4

    # 5) Tiny frame count (T < 8) -> whole-array fallback kernel.
    x5 = jnp.abs(jax.random.normal(k[8], (2, 5, 64), dtype=jnp.float32))
    y5 = jnp.abs(jax.random.normal(k[9], (2, 5, 64), dtype=jnp.float32))
    out5 = jax.block_until_ready(spectral_convergence_loss(x5, y5))
    assert jnp.allclose(out5, _reference(x5, y5), rtol=2e-5, atol=1e-6), out5

    print("KERNEL_OK")
</pallas_src>

<mosaic_0001>
module attributes {stable_mosaic.version = 11 : i64} {
  func.func @kernel(%arg0: i32, %arg1: i32, %arg2: memref<2x16x128xf32, #tpu.memory_space<vmem>>, %arg3: memref<2x16x128xf32, #tpu.memory_space<vmem>>, %arg4: memref<8x128xf32, #tpu.memory_space<vmem>>, %arg5: memref<8x128xf32, #tpu.memory_space<vmem>>) attributes {dimension_semantics = [#tpu.dimension_semantics<parallel>, #tpu.dimension_semantics<arbitrary>], iteration_bounds = array<i64: 1, 1>, scalar_prefetch = 0 : i64, scratch_operands = 0 : i64, tpu.core_type = #tpu.core_type<tc>, window_params = [{transform_indices = @transform_0, window_bounds = array<i64: 2, 16, 128>}, {transform_indices = @transform_1, window_bounds = array<i64: 2, 16, 128>}, {transform_indices = @transform_2, window_bounds = array<i64: 8, 128>}, {transform_indices = @transform_3, window_bounds = array<i64: 8, 128>}]} {
    %c0_i32 = arith.constant 0 : i32
    %0 = arith.cmpi eq, %arg1, %c0_i32 : i32
    %1 = arith.extui %0 : i1 to i32
    %c0_i32_0 = arith.constant 0 : i32
    %2 = arith.cmpi ne, %1, %c0_i32_0 : i32
    scf.if %2 {
      %cst_28 = arith.constant 0.000000e+00 : f32
      %41 = vector.broadcast %cst_28 : f32 to vector<8x128xf32>
      %c0_29 = arith.constant 0 : index
      %c0_30 = arith.constant 0 : index
      %42 = vector.load %arg4[%c0_29, %c0_30] : memref<8x128xf32, #tpu.memory_space<vmem>>, vector<8x128xf32>
      tpu.vector_store %arg4[%c0_29, %c0_30], %41 {strides = array<i32>} : memref<8x128xf32, #tpu.memory_space<vmem>>, vector<8x128xf32>,
      %cst_31 = arith.constant 0.000000e+00 : f32
      %43 = vector.broadcast %cst_31 : f32 to vector<8x128xf32>
      %c0_32 = arith.constant 0 : index
      %c0_33 = arith.constant 0 : index
      %44 = vector.load %arg5[%c0_32, %c0_33] : memref<8x128xf32, #tpu.memory_space<vmem>>, vector<8x128xf32>
      tpu.vector_store %arg5[%c0_32, %c0_33], %43 {strides = array<i32>} : memref<8x128xf32, #tpu.memory_space<vmem>>, vector<8x128xf32>,
    } else {
    }
    %c0_i32_1 = arith.constant 0 : i32
    %3 = arith.index_cast %c0_i32_1 : i32 to index
    %c0 = arith.constant 0 : index
    %c0_2 = arith.constant 0 : index
    %4 = vector.load %arg2[%3, %c0, %c0_2] : memref<2x16x128xf32, #tpu.memory_space<vmem>>, vector<1x16x128xf32>
    %5 = vector.shape_cast %4 : vector<1x16x128xf32> to vector<16x128xf32>
    %6 = arith.index_cast %c0_i32_1 : i32 to index
    %c0_3 = arith.constant 0 : index
    %c0_4 = arith.constant 0 : index
    %7 = vector.load %arg3[%6, %c0_3, %c0_4] : memref<2x16x128xf32, #tpu.memory_space<vmem>>, vector<1x16x128xf32>
    %8 = vector.shape_cast %7 : vector<1x16x128xf32> to vector<16x128xf32>
    %9 = arith.subf %8, %5 : vector<16x128xf32>
    %c0_5 = arith.constant 0 : index
    %c0_6 = arith.constant 0 : index
    %10 = vector.load %arg4[%c0_5, %c0_6] : memref<8x128xf32, #tpu.memory_space<vmem>>, vector<8x128xf32>
    %11 = arith.mulf %9, %9 : vector<16x128xf32>
    %12 = vector.shape_cast %11 : vector<16x128xf32> to vector<2x8x128xf32>
    %cst = arith.constant dense<0.000000e+00> : vector<8x128xf32>
    %13 = vector.multi_reduction <add>, %12, %cst [0] : vector<2x8x128xf32> to vector<8x128xf32>
    %14 = arith.addf %10, %13 : vector<8x128xf32>
    %c0_7 = arith.constant 0 : index
    %c0_8 = arith.constant 0 : index
    %15 = vector.load %arg4[%c0_7, %c0_8] : memref<8x128xf32, #tpu.memory_space<vmem>>, vector<8x128xf32>
    tpu.vector_store %arg4[%c0_7, %c0_8], %14 {strides = array<i32>} : memref<8x128xf32, #tpu.memory_space<vmem>>, vector<8x128xf32>,
    %c0_9 = arith.constant 0 : index
    %c0_10 = arith.constant 0 : index
    %16 = vector.load %arg5[%c0_9, %c0_10] : memref<8x128xf32, #tpu.memory_space<vmem>>, vector<8x128xf32>
    %17 = arith.mulf %8, %8 : vector<16x128xf32>
    %18 = vector.shape_cast %17 : vector<16x128xf32> to vector<2x8x128xf32>
    %cst_11 = arith.constant dense<0.000000e+00> : vector<8x128xf32>
    %19 = vector.multi_reduction <add>, %18, %cst_11 [0] : vector<2x8x128xf32> to vector<8x128xf32>
    %20 = arith.addf %16, %19 : vector<8x128xf32>
    %c0_12 = arith.constant 0 : index
    %c0_13 = arith.constant 0 : index
    %21 = vector.load %arg5[%c0_12, %c0_13] : memref<8x128xf32, #tpu.memory_space<vmem>>, vector<8x128xf32>
    tpu.vector_store %arg5[%c0_12, %c0_13], %20 {strides = array<i32>} : memref<8x128xf32, #tpu.memory_space<vmem>>, vector<8x128xf32>,
    %c1_i32 = arith.constant 1 : i32
    %22 = arith.index_cast %c1_i32 : i32 to index
    %c0_14 = arith.constant 0 : index
    %c0_15 = arith.constant 0 : index
    %23 = vector.load %arg2[%22, %c0_14, %c0_15] : memref<2x16x128xf32, #tpu.memory_space<vmem>>, vector<1x16x128xf32>
    %24 = vector.shape_cast %23 : vector<1x16x128xf32> to vector<16x128xf32>
    %25 = arith.index_cast %c1_i32 : i32 to index
    %c0_16 = arith.constant 0 : index
    %c0_17 = arith.constant 0 : index
    %26 = vector.load %arg3[%25, %c0_16, %c0_17] : memref<2x16x128xf32, #tpu.memory_space<vmem>>, vector<1x16x128xf32>
    %27 = vector.shape_cast %26 : vector<1x16x128xf32> to vector<16x128xf32>
    %28 = arith.subf %27, %24 : vector<16x128xf32>
    %c0_18 = arith.constant 0 : index
    %c0_19 = arith.constant 0 : index
    %29 = vector.load %arg4[%c0_18, %c0_19] : memref<8x128xf32, #tpu.memory_space<vmem>>, vector<8x128xf32>
    %30 = arith.mulf %28, %28 : vector<16x128xf32>
    %31 = vector.shape_cast %30 : vector<16x128xf32> to vector<2x8x128xf32>
    %cst_20 = arith.constant dense<0.000000e+00> : vector<8x128xf32>
    %32 = vector.multi_reduction <add>, %31, %cst_20 [0] : vector<2x8x128xf32> to vector<8x128xf32>
    %33 = arith.addf %29, %32 : vector<8x128xf32>
    %c0_21 = arith.constant 0 : index
    %c0_22 = arith.constant 0 : index
    %34 = vector.load %arg4[%c0_21, %c0_22] : memref<8x128xf32, #tpu.memory_space<vmem>>, vector<8x128xf32>
    tpu.vector_store %arg4[%c0_21, %c0_22], %33 {strides = array<i32>} : memref<8x128xf32, #tpu.memory_space<vmem>>, vector<8x128xf32>,
    %c0_23 = arith.constant 0 : index
    %c0_24 = arith.constant 0 : index
    %35 = vector.load %arg5[%c0_23, %c0_24] : memref<8x128xf32, #tpu.memory_space<vmem>>, vector<8x128xf32>
    %36 = arith.mulf %27, %27 : vector<16x128xf32>
    %37 = vector.shape_cast %36 : vector<16x128xf32> to vector<2x8x128xf32>
    %cst_25 = arith.constant dense<0.000000e+00> : vector<8x128xf32>
    %38 = vector.multi_reduction <add>, %37, %cst_25 [0] : vector<2x8x128xf32> to vector<8x128xf32>
    %39 = arith.addf %35, %38 : vector<8x128xf32>
    %c0_26 = arith.constant 0 : index
    %c0_27 = arith.constant 0 : index
    %40 = vector.load %arg5[%c0_26, %c0_27] : memref<8x128xf32, #tpu.memory_space<vmem>>, vector<8x128xf32>
    tpu.vector_store %arg5[%c0_26, %c0_27], %39 {strides = array<i32>} : memref<8x128xf32, #tpu.memory_space<vmem>>, vector<8x128xf32>,
    %c2_i32 = arith.constant 2 : i32
    return
  }
  func.func @transform_0(%arg0: i32, %arg1: i32) -> (i32, i32, i32) {
    %c0_i32 = arith.constant 0 : i32
    %c0_i32_0 = arith.constant 0 : i32
    return %arg0, %arg1, %c0_i32 : i32, i32, i32
  }
  func.func @transform_1(%arg0: i32, %arg1: i32) -> (i32, i32, i32) {
    %c0_i32 = arith.constant 0 : i32
    %c0_i32_0 = arith.constant 0 : i32
    return %arg0, %arg1, %c0_i32 : i32, i32, i32
  }
  func.func @transform_2(%arg0: i32, %arg1: i32) -> (i32, i32) {
    %c0_i32 = arith.constant 0 : i32
    %c0_i32_0 = arith.constant 0 : i32
    return %arg0, %c0_i32 : i32, i32
  }
  func.func @transform_3(%arg0: i32, %arg1: i32) -> (i32, i32) {
    %c0_i32 = arith.constant 0 : i32
    %c0_i32_0 = arith.constant 0 : i32
    return %arg0, %c0_i32 : i32, i32
  }
}

</mosaic_0001>

<bundles_post_ra>
// kernel: tpu_custom_call.1
= control target key start
LH: loop header
LB: loop body
LE: loop exit
PB: predicated region body
PF: predicated region fallthrough
CT: control target
= control target key end

     0   :  { %9 = vsyncpa [#allocation3], 0  ;;  %s250_s0 = inlined_call_operand.hbm [shape: f32[2,16,128], index: 0, kind: input, shape index: {}]   ;;  %s251_s1 = inlined_call_operand.hbm [shape: f32[2,16,128], index: 1, kind: input, shape index: {}]   ;;  %s252_s2 = inlined_call_operand.hbm [shape: f32[8,128], index: 2, kind: output, shape index: {0}]   ;;  %s253_s3 = inlined_call_operand.hbm [shape: f32[8,128], index: 3, kind: output, shape index: {1}]  }
   0x1   :  { %10 = vsyncpa [#allocation6], 0 }
   0x2   :  { %11 = vsyncpa [#allocation4], 0 }
   0x3   :  { %12 = vsyncpa [#allocation9], 0  ;;  %s212_s12 = smov [#allocation2]  }
   0x4   :  { %s18_s13 = sshll.u32 %s212_s12, 4  ;;  %s19_s13 = int_to_ptr.vmem [resolvable:$true] %s18_s13 }
   0x5   :  { %s132_s14 = scalar_lea.vmem %s19_s13, 512  ;;  %p137_p1 = scmp.lt.s32.totalorder %s19_s13, %s19_s13 }
   0x6   :  { %p133_p0 = scmp.ne.s32.totalorder %s19_s13, %s132_s14  ;;  %p138_p2 = scmp.lt.s32.totalorder %s132_s14, %s132_s14 }
   0x8   :  { %p139_p3 = por %p138_p2, %p137_p1 }
   0xa   :  { %p140_p4 = pnand %p139_p3, %p133_p0 }
   0xc   :  { %143 = shalt.err (!%p140_p4)
}
   0xd   :  { %s213_s15 = smov 128   ;;  %s214_s16 = smov 8  }
   0xe   :  { %24 = dma.hbm_to_vmem [thread:$0]  %s250_s0, 512, %s19_s13, [#allocation3], %s213_s15, %s213_s15, %s214_s16  }
   0xf   :  { %s215_s19 = smov [#allocation5]  }
  0x10   :  { %s30_s20 = sshll.u32 %s215_s19, 4  ;;  %s31_s20 = int_to_ptr.vmem [resolvable:$true] %s30_s20 }
  0x11   :  { %s152_s21 = scalar_lea.vmem %s31_s20, 512  ;;  %p157_p6 = scmp.lt.s32.totalorder %s31_s20, %s31_s20 }
  0x12   :  { %p153_p5 = scmp.ne.s32.totalorder %s31_s20, %s152_s21  ;;  %p158_p7 = scmp.lt.s32.totalorder %s152_s21, %s152_s21 }
  0x14   :  { %p159_p8 = por %p158_p7, %p157_p6 }
  0x16   :  { %p160_p9 = pnand %p159_p8, %p153_p5 }
  0x18   :  { %163 = shalt.err (!%p160_p9)
}
  0x19   :  { %36 = dma.hbm_to_vmem [thread:$0]  %s251_s1, 512, %s31_s20, [#allocation6], %s213_s15, %s213_s15, %s214_s16  }
  0x1a   :  { %204 = dma.done.wait [#allocation3], 512  }
  0x1b   :  { %205 = vsyncadd [#allocation3], 4294966784 }
  0x1c   :  { %206 = dma.done.wait [#allocation6], 512  }
  0x1d   :  { %207 = vsyncadd [#allocation6], 4294966784  ;;  %v49_v0 = vld [vmem:[#allocation2] sm:$0xff]  ;;  %v50_v1 = vld [vmem:[#allocation2 + $0x8] sm:$0xff]  ;;  %s216_s0 = smov [#allocation8]   ;;  %s217_s24 = smov [#allocation7]  }
  0x1e   :  { %v51_v2 = vld [vmem:[#allocation5] sm:$0xff]  ;;  %v52_v3 = vld [vmem:[#allocation5 + $0x8] sm:$0xff]  ;;  %v68_v6 = vld [vmem:[#allocation2 + $0x10] sm:$0xff]  ;;  %s103_s1 = sshll.u32 %s216_s0, 4  ;;  %s93_s25 = sshll.u32 %s217_s24, 4  ;;  %s104_s1 = int_to_ptr.vmem [resolvable:$true] %s103_s1  ;;  %s94_s25 = int_to_ptr.vmem [resolvable:$true] %s93_s25 }
  0x1f   :  { %v53_v4 = vsub.f32 %v51_v2, %v49_v0  ;;  %v62_v5 = vmul.f32 %v51_v2, %v51_v2  ;;  %v69_v7 = vld [vmem:[#allocation2 + $0x18] sm:$0xff]  ;;  %v54_v8 = vsub.f32 %v52_v3, %v50_v1  ;;  %v63_v9 = vmul.f32 %v52_v3, %v52_v3  ;;  %v71_v10 = vld [vmem:[#allocation5 + $0x10] sm:$0xff]  ;;  %s164_s26 = scalar_lea.vmem %s104_s1, 128  ;;  %p169_p11 = scmp.lt.s32.totalorder %s104_s1, %s104_s1 }
  0x20   :  { %v72_v11 = vld [vmem:[#allocation5 + $0x18] sm:$0xff]  ;;  %v73_v13 = vsub.f32 %v71_v10, %v68_v6  ;;  %v82_v15 = vmul.f32 %v71_v10, %v71_v10  ;;  %p165_p10 = scmp.ne.s32.totalorder %s104_s1, %s164_s26  ;;  %p170_p12 = scmp.lt.s32.totalorder %s164_s26, %s164_s26 }
  0x21   :  { %v56_v12 = vmul.f32 %v53_v4, %v53_v4  ;;  %v74_v14 = vsub.f32 %v72_v11, %v69_v7  ;;  %v57_v16 = vmul.f32 %v54_v8, %v54_v8  ;;  %v64_v17 = vadd.f32 %v63_v9, %v62_v5 }
  0x22   :  { %v83_v18 = vmul.f32 %v72_v11, %v72_v11  ;;  %v76_v19 = vmul.f32 %v73_v13, %v73_v13  ;;  %p171_p13 = por %p170_p12, %p169_p11 }
  0x23   :  { %v77_v20 = vmul.f32 %v74_v14, %v74_v14  ;;  %v58_v21 = vadd.f32 %v57_v16, %v56_v12 }
  0x24   :  { %v84_v22 = vadd.f32 %v83_v18, %v82_v15  ;;  %p172_p0 = pnand %p171_p13, %p165_p10 }
  0x25   :  { %v78_v23 = vadd.f32 %v77_v20, %v76_v19 }
  0x26   :  { %v85_v24 = vadd.f32 %v84_v22, %v64_v17 }
  0x27   :  { %v79_v25 = vadd.f32 %v78_v23, %v58_v21 }
  0x28   :  { %86 = vst [vmem:[#allocation8] sm:$0xff] %v85_v24 }
  0x29   :  { %175 = shalt.err (!%p172_p0)
}
  0x2a   :  { %106 = dma.vmem_to_hbm [thread:$0]  %s104_s1, 128, %s253_s3, [#allocation9]   ;;  %80 = vst [vmem:[#allocation7] sm:$0xff] %v79_v25 }
  0x2b   :  { %s184_s29 = scalar_lea.vmem %s94_s25, 128  ;;  %p189_p2 = scmp.lt.s32.totalorder %s94_s25, %s94_s25 }
  0x2c   :  { %p185_p1 = scmp.ne.s32.totalorder %s94_s25, %s184_s29  ;;  %p190_p3 = scmp.lt.s32.totalorder %s184_s29, %s184_s29 }
  0x2e   :  { %p191_p4 = por %p190_p3, %p189_p2 }
  0x30   :  { %p192_p5 = pnand %p191_p4, %p185_p1 }
  0x32   :  { %195 = shalt.err (!%p192_p5)
}
  0x33   :  { %96 = dma.vmem_to_hbm [thread:$0]  %s94_s25, 128, %s252_s2, [#allocation4]  }
  0x34   :  { %208 = dma.done.wait [#allocation4], 128  }
  0x35   :  { %209 = vsyncadd [#allocation4], 4294967168 }
  0x36   :  { %210 = dma.done.wait [#allocation9], 128  }
  0x37   :  { %211 = vsyncadd [#allocation9], 4294967168 }
  0x38   :  { %113 = vsyncpa [#allocation3], 1 }
  0x39   :  { %114 = vsyncpa [#allocation6], 1 }
  0x3a   :  { %115 = vsyncpa [#allocation4], 1 }
  0x3b   :  { %116 = vsyncpa [#allocation9], 1 }

</bundles_post_ra>
